<compile_context>
chip_gen: v6e
topology: v6e:2x2x1
jax: 0.10.0
libtpu: 0.0.40
codegen_flags: <defaults>
</compile_context>

<pallas_src>
import jax
import jax.numpy as jnp
from jax import lax
from jax.experimental import pallas as pl
from jax.experimental.pallas import tpu as pltpu
import numpy as np


def pose_kernel(cam_id_ref, r_ref, t_ref, init_ref, out_ref):
    cid = cam_id_ref[0]
    base = 3 * cid

    def splat(s):
        # broadcast an SMEM scalar across the (8, 128) work tile
        return jnp.full((8, 128), s, dtype=jnp.float32)

    r0 = splat(r_ref[base + 0])
    r1 = splat(r_ref[base + 1])
    r2 = splat(r_ref[base + 2])
    t0 = splat(t_ref[base + 0])
    t1 = splat(t_ref[base + 1])
    t2 = splat(t_ref[base + 2])

    # Rodrigues coefficients (single divide; sin/cos/sqrt on the EUP path).
    nsq = r0 * r0 + r1 * r1 + r2 * r2
    norm = jnp.sqrt(nsq) + 1e-15              # matches torch: r.norm() + 1e-15
    inv = 1.0 / norm
    a = jnp.sin(norm) * inv                   # sin(theta)/theta
    b = (1.0 - jnp.cos(norm)) * (inv * inv)   # (1-cos(theta))/theta^2

    # c2w rotation entries with coefficients folded in:
    #   R = I + a*K + b*(r r^T - |r|^2 I)
    e00 = 1.0 + b * (r0 * r0 - nsq)
    e01 = -a * r2 + b * (r0 * r1)
    e02 = a * r1 + b * (r0 * r2)
    e10 = a * r2 + b * (r1 * r0)
    e11 = 1.0 + b * (r1 * r1 - nsq)
    e12 = -a * r0 + b * (r1 * r2)
    e20 = -a * r1 + b * (r2 * r0)
    e21 = a * r0 + b * (r2 * r1)
    e22 = 1.0 + b * (r2 * r2 - nsq)

    # Hoisted row masks (reused by every placement).
    row = lax.broadcasted_iota(jnp.int32, (8, 128), 0)
    is_r0 = row == 0
    is_r1 = row == 1
    is_r2 = row == 2
    is_r3 = row == 3

    def col_bcast(v0, v1, v2):
        # tile whose sublane i (all lanes) holds v_i for i<3, zero elsewhere
        return jnp.where(is_r0, v0,
                         jnp.where(is_r1, v1,
                                   jnp.where(is_r2, v2, 0.0)))

    # columns of c2w, broadcast across lanes
    col0 = col_bcast(e00, e10, e20)
    col1 = col_bcast(e01, e11, e21)
    col2 = col_bcast(e02, e12, e22)
    col3 = jnp.where(is_r0, t0,
                     jnp.where(is_r1, t1,
                               jnp.where(is_r2, t2,
                                         jnp.where(is_r3, 1.0, 0.0))))

    # init_c2w[cam_id], lane-aligned: rows 0..3 / lanes 0..3 valid, rest zero.
    init_tile = init_ref[0]                   # (8, 128)

    # VPU compose: out = sum_k (c2w col k over lanes) * (init row k over sublanes)
    out = (col0 * init_tile[0:1, :] +
           col1 * init_tile[1:2, :] +
           col2 * init_tile[2:3, :] +
           col3 * init_tile[3:4, :])
    out_ref[...] = out


def make_pose_retriever_params(r, t, init_c2w):
    """One-time 'module init': flatten r/t for SMEM and lane-pad init_c2w.

    Done once, outside the per-forward path (hoists the padding cost).
    """
    num_cams = r.shape[0]
    r_flat = jnp.asarray(r, jnp.float32).reshape(3 * num_cams)
    t_flat = jnp.asarray(t, jnp.float32).reshape(3 * num_cams)
    init_pad = jnp.zeros((num_cams, 8, 128), jnp.float32)
    init_pad = init_pad.at[:, :4, :4].set(jnp.asarray(init_c2w, jnp.float32))
    return r_flat, t_flat, init_pad


def pose_retriever_forward(cam_id, r_flat, t_flat, init_pad):
    """Returns the (4, 4) float32 camera-to-world matrix for `cam_id`."""
    cam_id_arr = jnp.asarray([cam_id], dtype=jnp.int32)

    out = pl.pallas_call(
        pose_kernel,
        out_shape=jax.ShapeDtypeStruct((8, 128), jnp.float32),
        grid_spec=pltpu.PrefetchScalarGridSpec(
            num_scalar_prefetch=1,            # cam_id
            grid=(1,),
            in_specs=[
                pl.BlockSpec(memory_space=pltpu.MemorySpace.SMEM),   # r (1-D)
                pl.BlockSpec(memory_space=pltpu.MemorySpace.SMEM),   # t (1-D)
                # 4 KiB lane-aligned init tile, gathered by cam_id in index_map
                pl.BlockSpec((1, 8, 128), lambda i, cid: (cid[0], 0, 0)),
            ],
            out_specs=pl.BlockSpec((8, 128), lambda i, cid: (0, 0)),
        ),
        compiler_params=pltpu.CompilerParams(
            dimension_semantics=("arbitrary",)),
    )(cam_id_arr, r_flat, t_flat, init_pad)

    return out[:4, :4]


def reference_forward(cam_id, r, t, init_c2w):
    """Pure-JAX reference (mirrors nerfmm make_c2w)."""
    rv = r[cam_id]
    tv = t[cam_id]
    theta = jnp.sqrt(jnp.sum(rv * rv)) + 1e-15
    K = jnp.array([[0.0, -rv[2], rv[1]],
                   [rv[2], 0.0, -rv[0]],
                   [-rv[1], rv[0], 0.0]], dtype=jnp.float32)
    R = (jnp.eye(3, dtype=jnp.float32)
         + (jnp.sin(theta) / theta) * K
         + ((1.0 - jnp.cos(theta)) / (theta * theta)) * (K @ K))
    c2w = jnp.concatenate([R, tv[:, None]], axis=1)
    c2w = jnp.concatenate(
        [c2w, jnp.array([[0.0, 0.0, 0.0, 1.0]], dtype=jnp.float32)], axis=0)
    return c2w @ init_c2w[cam_id]


if __name__ == "__main__":
    num_cams = 6
    cam_id = 3

    key = jax.random.PRNGKey(0)
    k_r, k_t, k_init = jax.random.split(key, 3)

    # Synthetic, deterministic "parameters" (module inits r/t to zeros and
    # init_c2w to identity; we perturb them so the kernel math is exercised).
    r = 0.3 * jax.random.normal(k_r, (num_cams, 3), dtype=jnp.float32)
    t = jax.random.normal(k_t, (num_cams, 3), dtype=jnp.float32)
    init_c2w = (jnp.eye(4, dtype=jnp.float32)[None].repeat(num_cams, axis=0)
                + 0.1 * jax.random.normal(k_init, (num_cams, 4, 4),
                                          dtype=jnp.float32))

    # "Module init": done once, not per forward call.
    r_flat, t_flat, init_pad = make_pose_retriever_params(r, t, init_c2w)
    r_flat, t_flat, init_pad = jax.block_until_ready((r_flat, t_flat, init_pad))

    out = pose_retriever_forward(cam_id, r_flat, t_flat, init_pad)
    out = jax.block_until_ready(out)

    expected = reference_forward(cam_id, r, t, init_c2w)
    np.testing.assert_allclose(np.asarray(out), np.asarray(expected),
                               rtol=1e-5, atol=1e-5)
    assert out.shape == (4, 4) and out.dtype == jnp.float32

    print("KERNEL_OK")
</pallas_src>

<mosaic_0001>
module attributes {stable_mosaic.version = 11 : i64} {
  func.func @pose_kernel(%arg0: i32, %arg1: memref<1xi32, #tpu.memory_space<smem>>, %arg2: memref<18xf32, #tpu.memory_space<smem>>, %arg3: memref<18xf32, #tpu.memory_space<smem>>, %arg4: memref<1x8x128xf32, #tpu.memory_space<vmem>>, %arg5: memref<8x128xf32, #tpu.memory_space<vmem>>) attributes {dimension_semantics = [#tpu.dimension_semantics<arbitrary>], iteration_bounds = array<i64: 1>, scalar_prefetch = 1 : i64, scratch_operands = 0 : i64, tpu.core_type = #tpu.core_type<tc>, window_params = [{transform_indices = @transform_0, window_bounds = array<i64: 18>}, {transform_indices = @transform_1, window_bounds = array<i64: 18>}, {transform_indices = @transform_2, window_bounds = array<i64: 1, 8, 128>}, {pipeline_mode = #tpu.pipeline_mode<synchronous>, transform_indices = @transform_3, window_bounds = array<i64: 8, 128>}]} {
    %c0 = arith.constant 0 : index
    %0 = memref.load %arg1[%c0] : memref<1xi32, #tpu.memory_space<smem>>
    %c3_i32 = arith.constant 3 : i32
    %1 = arith.muli %c3_i32, %0 : i32
    %c0_i32 = arith.constant 0 : i32
    %2 = arith.addi %1, %c0_i32 : i32
    %3 = arith.index_cast %2 : i32 to index
    %4 = memref.load %arg2[%3] : memref<18xf32, #tpu.memory_space<smem>>
    %5 = vector.broadcast %4 : f32 to vector<8x128xf32>
    %c1_i32 = arith.constant 1 : i32
    %6 = arith.addi %1, %c1_i32 : i32
    %7 = arith.index_cast %6 : i32 to index
    %8 = memref.load %arg2[%7] : memref<18xf32, #tpu.memory_space<smem>>
    %9 = vector.broadcast %8 : f32 to vector<8x128xf32>
    %c2_i32 = arith.constant 2 : i32
    %10 = arith.addi %1, %c2_i32 : i32
    %11 = arith.index_cast %10 : i32 to index
    %12 = memref.load %arg2[%11] : memref<18xf32, #tpu.memory_space<smem>>
    %13 = vector.broadcast %12 : f32 to vector<8x128xf32>
    %c0_i32_0 = arith.constant 0 : i32
    %14 = arith.addi %1, %c0_i32_0 : i32
    %15 = arith.index_cast %14 : i32 to index
    %16 = memref.load %arg3[%15] : memref<18xf32, #tpu.memory_space<smem>>
    %17 = vector.broadcast %16 : f32 to vector<8x128xf32>
    %c1_i32_1 = arith.constant 1 : i32
    %18 = arith.addi %1, %c1_i32_1 : i32
    %19 = arith.index_cast %18 : i32 to index
    %20 = memref.load %arg3[%19] : memref<18xf32, #tpu.memory_space<smem>>
    %21 = vector.broadcast %20 : f32 to vector<8x128xf32>
    %c2_i32_2 = arith.constant 2 : i32
    %22 = arith.addi %1, %c2_i32_2 : i32
    %23 = arith.index_cast %22 : i32 to index
    %24 = memref.load %arg3[%23] : memref<18xf32, #tpu.memory_space<smem>>
    %25 = vector.broadcast %24 : f32 to vector<8x128xf32>
    %26 = arith.mulf %5, %5 : vector<8x128xf32>
    %27 = arith.mulf %9, %9 : vector<8x128xf32>
    %28 = arith.addf %26, %27 : vector<8x128xf32>
    %29 = arith.mulf %13, %13 : vector<8x128xf32>
    %30 = arith.addf %28, %29 : vector<8x128xf32>
    %31 = math.sqrt %30 : vector<8x128xf32>
    %cst = arith.constant 1.000000e-15 : f32
    %32 = vector.broadcast %cst : f32 to vector<8x128xf32>
    %33 = arith.addf %31, %32 : vector<8x128xf32>
    %cst_3 = arith.constant 1.000000e+00 : f32
    %34 = vector.broadcast %cst_3 : f32 to vector<8x128xf32>
    %35 = arith.divf %34, %33 : vector<8x128xf32>
    %36 = math.sin %33 : vector<8x128xf32>
    %37 = arith.mulf %36, %35 : vector<8x128xf32>
    %38 = math.cos %33 : vector<8x128xf32>
    %cst_4 = arith.constant 1.000000e+00 : f32
    %39 = vector.broadcast %cst_4 : f32 to vector<8x128xf32>
    %40 = arith.subf %39, %38 : vector<8x128xf32>
    %41 = arith.mulf %35, %35 : vector<8x128xf32>
    %42 = arith.mulf %40, %41 : vector<8x128xf32>
    %43 = arith.mulf %5, %5 : vector<8x128xf32>
    %44 = arith.subf %43, %30 : vector<8x128xf32>
    %45 = arith.mulf %42, %44 : vector<8x128xf32>
    %cst_5 = arith.constant 1.000000e+00 : f32
    %46 = vector.broadcast %cst_5 : f32 to vector<8x128xf32>
    %47 = arith.addf %46, %45 : vector<8x128xf32>
    %cst_6 = arith.constant 0.000000e+00 : f32
    %48 = vector.broadcast %cst_6 : f32 to vector<8x128xf32>
    %49 = arith.subf %48, %37 : vector<8x128xf32>
    %50 = arith.mulf %49, %13 : vector<8x128xf32>
    %51 = arith.mulf %5, %9 : vector<8x128xf32>
    %52 = arith.mulf %42, %51 : vector<8x128xf32>
    %53 = arith.addf %50, %52 : vector<8x128xf32>
    %54 = arith.mulf %37, %9 : vector<8x128xf32>
    %55 = arith.mulf %5, %13 : vector<8x128xf32>
    %56 = arith.mulf %42, %55 : vector<8x128xf32>
    %57 = arith.addf %54, %56 : vector<8x128xf32>
    %58 = arith.mulf %37, %13 : vector<8x128xf32>
    %59 = arith.mulf %9, %5 : vector<8x128xf32>
    %60 = arith.mulf %42, %59 : vector<8x128xf32>
    %61 = arith.addf %58, %60 : vector<8x128xf32>
    %62 = arith.mulf %9, %9 : vector<8x128xf32>
    %63 = arith.subf %62, %30 : vector<8x128xf32>
    %64 = arith.mulf %42, %63 : vector<8x128xf32>
    %cst_7 = arith.constant 1.000000e+00 : f32
    %65 = vector.broadcast %cst_7 : f32 to vector<8x128xf32>
    %66 = arith.addf %65, %64 : vector<8x128xf32>
    %cst_8 = arith.constant 0.000000e+00 : f32
    %67 = vector.broadcast %cst_8 : f32 to vector<8x128xf32>
    %68 = arith.subf %67, %37 : vector<8x128xf32>
    %69 = arith.mulf %68, %5 : vector<8x128xf32>
    %70 = arith.mulf %9, %13 : vector<8x128xf32>
    %71 = arith.mulf %42, %70 : vector<8x128xf32>
    %72 = arith.addf %69, %71 : vector<8x128xf32>
    %cst_9 = arith.constant 0.000000e+00 : f32
    %73 = vector.broadcast %cst_9 : f32 to vector<8x128xf32>
    %74 = arith.subf %73, %37 : vector<8x128xf32>
    %75 = arith.mulf %74, %9 : vector<8x128xf32>
    %76 = arith.mulf %13, %5 : vector<8x128xf32>
    %77 = arith.mulf %42, %76 : vector<8x128xf32>
    %78 = arith.addf %75, %77 : vector<8x128xf32>
    %79 = arith.mulf %37, %5 : vector<8x128xf32>
    %80 = arith.mulf %13, %9 : vector<8x128xf32>
    %81 = arith.mulf %42, %80 : vector<8x128xf32>
    %82 = arith.addf %79, %81 : vector<8x128xf32>
    %83 = arith.mulf %13, %13 : vector<8x128xf32>
    %84 = arith.subf %83, %30 : vector<8x128xf32>
    %85 = arith.mulf %42, %84 : vector<8x128xf32>
    %cst_10 = arith.constant 1.000000e+00 : f32
    %86 = vector.broadcast %cst_10 : f32 to vector<8x128xf32>
    %87 = arith.addf %86, %85 : vector<8x128xf32>
    %88 = tpu.iota {dimensions = array<i32: 0>} : vector<8x128xi32>
    %c0_i32_11 = arith.constant 0 : i32
    %89 = vector.broadcast %c0_i32_11 : i32 to vector<8x128xi32>
    %90 = arith.cmpi eq, %88, %89 : vector<8x128xi32>
    %c1_i32_12 = arith.constant 1 : i32
    %91 = vector.broadcast %c1_i32_12 : i32 to vector<8x128xi32>
    %92 = arith.cmpi eq, %88, %91 : vector<8x128xi32>
    %c2_i32_13 = arith.constant 2 : i32
    %93 = vector.broadcast %c2_i32_13 : i32 to vector<8x128xi32>
    %94 = arith.cmpi eq, %88, %93 : vector<8x128xi32>
    %c3_i32_14 = arith.constant 3 : i32
    %95 = vector.broadcast %c3_i32_14 : i32 to vector<8x128xi32>
    %96 = arith.cmpi eq, %88, %95 : vector<8x128xi32>
    %cst_15 = arith.constant 0.000000e+00 : f32
    %97 = vector.broadcast %cst_15 : f32 to vector<8x128xf32>
    %98 = arith.select %94, %78, %97 : vector<8x128xi1>, vector<8x128xf32>
    %99 = arith.select %92, %61, %98 : vector<8x128xi1>, vector<8x128xf32>
    %100 = arith.select %90, %47, %99 : vector<8x128xi1>, vector<8x128xf32>
    %cst_16 = arith.constant 0.000000e+00 : f32
    %101 = vector.broadcast %cst_16 : f32 to vector<8x128xf32>
    %102 = arith.select %94, %82, %101 : vector<8x128xi1>, vector<8x128xf32>
    %103 = arith.select %92, %66, %102 : vector<8x128xi1>, vector<8x128xf32>
    %104 = arith.select %90, %53, %103 : vector<8x128xi1>, vector<8x128xf32>
    %cst_17 = arith.constant 0.000000e+00 : f32
    %105 = vector.broadcast %cst_17 : f32 to vector<8x128xf32>
    %106 = arith.select %94, %87, %105 : vector<8x128xi1>, vector<8x128xf32>
    %107 = arith.select %92, %72, %106 : vector<8x128xi1>, vector<8x128xf32>
    %108 = arith.select %90, %57, %107 : vector<8x128xi1>, vector<8x128xf32>
    %cst_18 = arith.constant 1.000000e+00 : f32
    %cst_19 = arith.constant 0.000000e+00 : f32
    %109 = vector.broadcast %cst_18 : f32 to vector<8x128xf32>
    %110 = vector.broadcast %cst_19 : f32 to vector<8x128xf32>
    %111 = arith.select %96, %109, %110 : vector<8x128xi1>, vector<8x128xf32>
    %112 = arith.select %94, %25, %111 : vector<8x128xi1>, vector<8x128xf32>
    %113 = arith.select %92, %21, %112 : vector<8x128xi1>, vector<8x128xf32>
    %114 = arith.select %90, %17, %113 : vector<8x128xi1>, vector<8x128xf32>
    %c0_20 = arith.constant 0 : index
    %c0_21 = arith.constant 0 : index
    %c0_22 = arith.constant 0 : index
    %115 = vector.load %arg4[%c0_20, %c0_21, %c0_22] : memref<1x8x128xf32, #tpu.memory_space<vmem>>, vector<1x8x128xf32>
    %116 = vector.shape_cast %115 : vector<1x8x128xf32> to vector<8x128xf32>
    %117 = vector.extract_strided_slice %116 {offsets = [0, 0], sizes = [1, 128], strides = [1, 1]} : vector<8x128xf32> to vector<1x128xf32>
    %118 = vector.broadcast %117 : vector<1x128xf32> to vector<8x128xf32>
    %119 = arith.mulf %100, %118 : vector<8x128xf32>
    %120 = vector.extract_strided_slice %116 {offsets = [1, 0], sizes = [1, 128], strides = [1, 1]} : vector<8x128xf32> to vector<1x128xf32>
    %121 = vector.broadcast %120 : vector<1x128xf32> to vector<8x128xf32>
    %122 = arith.mulf %104, %121 : vector<8x128xf32>
    %123 = arith.addf %119, %122 : vector<8x128xf32>
    %124 = vector.extract_strided_slice %116 {offsets = [2, 0], sizes = [1, 128], strides = [1, 1]} : vector<8x128xf32> to vector<1x128xf32>
    %125 = vector.broadcast %124 : vector<1x128xf32> to vector<8x128xf32>
    %126 = arith.mulf %108, %125 : vector<8x128xf32>
    %127 = arith.addf %123, %126 : vector<8x128xf32>
    %128 = vector.extract_strided_slice %116 {offsets = [3, 0], sizes = [1, 128], strides = [1, 1]} : vector<8x128xf32> to vector<1x128xf32>
    %129 = vector.broadcast %128 : vector<1x128xf32> to vector<8x128xf32>
    %130 = arith.mulf %114, %129 : vector<8x128xf32>
    %131 = arith.addf %127, %130 : vector<8x128xf32>
    %c0_23 = arith.constant 0 : index
    %c0_24 = arith.constant 0 : index
    %132 = vector.load %arg5[%c0_23, %c0_24] : memref<8x128xf32, #tpu.memory_space<vmem>>, vector<8x128xf32>
    tpu.vector_store %arg5[%c0_23, %c0_24], %131 {strides = array<i32>} : memref<8x128xf32, #tpu.memory_space<vmem>>, vector<8x128xf32>,
    return
  }
  func.func @transform_0(%arg0: i32, %arg1: memref<1xi32, #tpu.memory_space<smem>>) -> i32 {
    %c0_i32 = arith.constant 0 : i32
    %c0_i32_0 = arith.constant 0 : i32
    return %c0_i32 : i32
  }
  func.func @transform_1(%arg0: i32, %arg1: memref<1xi32, #tpu.memory_space<smem>>) -> i32 {
    %c0_i32 = arith.constant 0 : i32
    %c0_i32_0 = arith.constant 0 : i32
    return %c0_i32 : i32
  }
  func.func @transform_2(%arg0: i32, %arg1: memref<1xi32, #tpu.memory_space<smem>>) -> (i32, i32, i32) {
    %c0 = arith.constant 0 : index
    %0 = memref.load %arg1[%c0] : memref<1xi32, #tpu.memory_space<smem>>
    %c0_i32 = arith.constant 0 : i32
    %c0_i32_0 = arith.constant 0 : i32
    %c0_i32_1 = arith.constant 0 : i32
    return %0, %c0_i32, %c0_i32_0 : i32, i32, i32
  }
  func.func @transform_3(%arg0: i32, %arg1: memref<1xi32, #tpu.memory_space<smem>>) -> (i32, i32) {
    %c0_i32 = arith.constant 0 : i32
    %c0_i32_0 = arith.constant 0 : i32
    %c0_i32_1 = arith.constant 0 : i32
    return %c0_i32, %c0_i32_0 : i32, i32
  }
}

</mosaic_0001>

<bundles_post_ra>
// kernel: tpu_custom_call.1
= control target key start
LH: loop header
LB: loop body
LE: loop exit
PB: predicated region body
PF: predicated region fallthrough
CT: control target
= control target key end

     0   :  { %10 = vsyncpa [#allocation7], 0  ;;  %s672_s0 = inlined_call_operand.<no memory space> [shape: s32[1], index: 0, kind: input, shape index: {}]   ;;  %s673_s1 = inlined_call_operand.vmem [shape: f32[18], index: 1, kind: input, shape index: {}]   ;;  %s674_s2 = inlined_call_operand.vmem [shape: f32[18], index: 2, kind: input, shape index: {}]   ;;  %s675_s3 = inlined_call_operand.hbm [shape: f32[6,8,128], index: 3, kind: input, shape index: {}]   ;;  %s676_s4 = inlined_call_operand.hbm [shape: f32[8,128], index: 4, kind: output, shape index: {}]  }
   0x1   :  { %11 = vsyncpa [#allocation9], 0 }
   0x2   :  { %12 = vsyncpa [#allocation5], 0 }
   0x3   :  { %13 = vsyncpa [#allocation6], 0  ;;  %s20_s17 = sshll.u32 %s673_s1, 4  ;;  %s30_s20 = sshll.u32 %s674_s2, 4  ;;  %s21_s17 = int_to_ptr.vmem [resolvable:$true] %s20_s17  ;;  %s31_s20 = int_to_ptr.vmem [resolvable:$true] %s30_s20 }
   0x4   :  { %s423_s21 = scalar_lea.vmem %s21_s17, 16  ;;  %p428_p1 = scmp.lt.s32.totalorder %s21_s17, %s21_s17 }
   0x5   :  { %p424_p0 = scmp.ne.s32.totalorder %s21_s17, %s423_s21  ;;  %p429_p2 = scmp.lt.s32.totalorder %s423_s21, %s423_s21 }
   0x7   :  { %p430_p3 = por %p429_p2, %p428_p1 }
   0x9   :  { %p431_p4 = pnand %p430_p3, %p424_p0 }
   0xb   :  { %434 = shalt.err (!%p431_p4)
}
   0xc   :  { %s497_s22 = smov [#allocation4]   ;;  %s435_s23 = scalar_lea.vmem %s31_s20, 16 }
   0xd   :  { %23 = dma.vmem_to_smem %s21_s17, 16, %s497_s22, [#allocation7]  }
   0xe   :  { %p436_p5 = scmp.ne.s32.totalorder %s31_s20, %s435_s23  ;;  %p440_p6 = scmp.lt.s32.totalorder %s31_s20, %s31_s20 }
   0xf   :  { %p441_p7 = scmp.lt.s32.totalorder %s435_s23, %s435_s23 }
  0x11   :  { %p442_p8 = por %p441_p7, %p440_p6 }
  0x13   :  { %p443_p9 = pnand %p442_p8, %p436_p5 }
  0x15   :  { %446 = shalt.err (!%p443_p9)
}
  0x16   :  { %s498_s1 = smov [#allocation8]   ;;  %s391_s25 = sshll.u32 %s672_s0, 7 }
  0x17   :  { %33 = dma.vmem_to_smem %s31_s20, 16, %s498_s1, [#allocation9]  }
  0x18   :  { %s41_s28 = scalar_lea.hbm %s675_s3, %s391_s25  ;;  %s499_s29 = smov [#allocation10]  }
  0x19   :  { %s43_s30 = sshll.u32 %s499_s29, 4  ;;  %s447_s5 = scalar_lea.hbm %s41_s28, 128  ;;  %s44_s30 = int_to_ptr.vmem [resolvable:$true] %s43_s30 }
  0x1a   :  { %p448_p10 = scmp.ne.s32.totalorder %s41_s28, %s447_s5  ;;  %s449_s8 = scalar_lea.hbm %s675_s3, 768 }
  0x1b   :  { %p450_p11 = scmp.lt.s32.totalorder %s41_s28, %s675_s3  ;;  %p451_p12 = scmp.lt.s32.totalorder %s449_s8, %s447_s5 }
  0x1d   :  { %p452_p13 = por %p451_p12, %p450_p11 }
  0x1f   :  { %p453_p0 = pnand %p452_p13, %p448_p10 }
  0x21   :  { %456 = shalt.err (!%p453_p0)
}
  0x22   :  { %s457_s11 = scalar_lea.vmem %s44_s30, 128  ;;  %p462_p2 = scmp.lt.s32.totalorder %s44_s30, %s44_s30 }
  0x23   :  { %p458_p1 = scmp.ne.s32.totalorder %s44_s30, %s457_s11  ;;  %p463_p3 = scmp.lt.s32.totalorder %s457_s11, %s457_s11 }
  0x25   :  { %p464_p4 = por %p463_p3, %p462_p2 }
  0x27   :  { %p465_p5 = pnand %p464_p4, %p458_p1 }
  0x29   :  { %468 = shalt.err (!%p465_p5)
}
  0x2a   :  { %46 = dma.hbm_to_vmem [thread:$0]  %s41_s28, 128, %s44_s30, [#allocation5]  }
  0x2b   :  { %489 = dma.done.wait [#allocation7], 16  }
  0x2c   :  { %490 = vsyncadd [#allocation7], 4294967280 }
  0x2d   :  { %491 = dma.done.wait [#allocation9], 16  }
  0x2e   :  { %492 = vsyncadd [#allocation9], 4294967280 }
  0x2f   :  { %493 = dma.done.wait [#allocation5], 128  }
  0x30   :  { %494 = vsyncadd [#allocation5], 4294967168 }
  0x31   :  { %56 = sfence }
  0x32   :  { %s59_s13 = smul.u32 3, %s672_s0  ;;  %v328_v0 = vlaneseq  ;;  %v500_v8 = vmov 0.0   ;;  %v501_v38 = vmov 683565275   ;;  %v502_v40 = vmov 2475754826  }
  0x33   :  { %v503_v42 = vmov 2131351028   ;;  %v504_v44 = vmov 2102212464   ;;  %v505_v46 = vmov 920167782  }
  0x34   :  { %s60_s14 = sld [smem:[#allocation4 + %s59_s13]]  ;;  %s62_s15 = sadd.s32 1, %s59_s13  ;;  %v554_v1 = vshrl.u32 %v328_v0, 7  ;;  %v506_v53 = vmov 1326507024  }
  0x35   :  { %s63_s16 = sld [smem:[#allocation4 + %s62_s15]]  ;;  %s65_s17 = sadd.s32 2, %s59_s13 }
  0x36   :  { %s66_s18 = sld [smem:[#allocation4 + %s65_s17]]  ;;  %vm333_vm0 = vcmp.eq.s32.totalorder %v554_v1, 3  ;;  %vm332_vm1 = vcmp.eq.s32.totalorder %v554_v1, 2  ;;  %vm331_vm2 = vcmp.eq.s32.totalorder %v554_v1, 1  ;;  %vm330_vm3 = vcmp.eq.s32.totalorder %v554_v1, 0  ;;  %s507_s0 = smov [#allocation11]  }
  0x37   :  { %s68_s19 = sld [smem:[#allocation8 + %s59_s13]]  ;;  %v343_v9 = vsel %vm333_vm0, 1.0, %v500_v8  ;;  %s378_s22 = sshll.u32 %s507_s0, 4  ;;  %s379_s22 = int_to_ptr.vmem [resolvable:$true] %s378_s22 }
  0x38   :  { %s70_s20 = sld [smem:[#allocation8 + %s62_s15]]  ;;  %s469_s23 = scalar_lea.vmem %s379_s22, 128 }
  0x39   :  { %s72_s21 = sld [smem:[#allocation8 + %s65_s17]]  ;;  %p470_p6 = scmp.ne.s32.totalorder %s379_s22, %s469_s23 }
  0x3a   :  { %v556_v2 = vstv %s60_s14  ;;  %p474_p7 = scmp.lt.s32.totalorder %s379_s22, %s379_s22  ;;  %p475_p8 = scmp.lt.s32.totalorder %s469_s23, %s469_s23 }
  0x3b   :  { %v559_v3 = vstv %s63_s16  ;;  %v563_v4 = vmul.f32 %v556_v2, %v556_v2 }
  0x3c   :  { %v565_v5 = vstv %s66_s18  ;;  %v569_v6 = vmul.f32 %v559_v3, %v559_v3  ;;  %p476_p9 = por %p475_p8, %p474_p7 }
  0x3d   :  { %v573_v7 = vmul.f32 %v565_v5, %v565_v5  ;;  %v69_v13 = vstv %s68_s19 }
  0x3e   :  { %v71_v10 = vstv %s70_s20  ;;  %v76_v11 = vadd.f32 %v569_v6, %v563_v4  ;;  %p477_p10 = pnand %p476_p9, %p470_p6 }
  0x3f   :  { %v73_v12 = vstv %s72_s21 }
  0x40   :  { %v579_v14 = vadd.f32 %v573_v7, %v76_v11  ;;  %v344_v15 = vsel %vm332_vm1, %v73_v12, %v343_v9 }
  0x41   :  { %v345_v16 = vsel %vm331_vm2, %v71_v10, %v344_v15 }
  0x42   :  { %415 = vrsqrt.f32 %v579_v14  ;;  %v300_v17 = vsub.f32 %v563_v4, %v579_v14  ;;  %v314_v18 = vsub.f32 %v569_v6, %v579_v14  ;;  %v325_v19 = vsub.f32 %v573_v7, %v579_v14 }
  0x43   :  { %v596_v20 = vsel %vm330_vm3, %v69_v13, %v345_v16  ;;  %vm81_vm4 = vcmp.eq.f32.partialorder %v579_v14, inf  ;;  %v84_v22 = vand.u32 2147483648, %v579_v14  ;;  %vm83_vm5 = vcmp.eq.f32.partialorder %v579_v14, 0.0 }
  0x44   :  { %v367_v4 = vsub.s32 3, %v554_v1 }
  0x4f   :  { %v416_v21 = vpop.eup %415 }
  0x50   :  { %v80_v23 = vmul.f32 %v416_v21, %v579_v14 }
  0x52   :  { %v82_v24 = vsel %vm81_vm4, %v579_v14, %v80_v23 }
  0x53   :  { %v85_v25 = vsel %vm83_vm5, %v84_v22, %v82_v24 }
  0x54   :  { %v603_v26 = vadd.f32 1e-15, %v85_v25 }
  0x56   :  { %v92_v27 = vand.u32 2139095040, %v603_v26  ;;  %v89_v29 = vand.u32 2147483647, %v603_v26  ;;  %vm91_vm13 = vcmp.lt.s32.totalorder %v603_v26, 0 }
  0x58   :  { %v93_v28 = vshrl.u32 %v92_v27, 23  ;;  %v96_v32 = vand.u32 8388607, %v89_v29  ;;  %vm90_vm14 = vcmp.le.f32.partialorder %v89_v29, 0.7853982 }
  0x5a   :  { %v392_v30 = vadd.s32 4294967169, %v93_v28  ;;  %v97_v35 = vor.u32 8388608, %v96_v32 }
  0x5c   :  { %v99_v31 = vadd.s32 1, %v392_v30  ;;  %v137_v55 = vshll.u32 %v97_v35, 8 }
  0x5e   :  { %vm100_vm6 = vcmp.gt.s32.totalorder %v99_v31, 0 }
  0x5f   :  { %v101_v33 = vsel %vm100_vm6, %v99_v31, 0 }
  0x60   :  { %v103_v34 = vand.u32 31, %v101_v33  ;;  %v102_v36 = vshrl.u32 %v101_v33, 5 }
  0x62   :  { %v104_v37 = vsub.s32 32, %v103_v34  ;;  %v106_v39 = vshll.u32 %v501_v38, %v103_v34  ;;  %v109_v41 = vshll.u32 %v502_v40, %v103_v34  ;;  %v112_v43 = vshll.u32 %v503_v42, %v103_v34 }
  0x63   :  { %v115_v45 = vshll.u32 %v504_v44, %v103_v34  ;;  %v118_v47 = vshll.u32 %v505_v46, %v103_v34  ;;  %vm121_vm7 = vcmp.lt.s32.totalorder %v102_v36, 1  ;;  %vm124_vm8 = vcmp.lt.s32.totalorder %v102_v36, 4 }
  0x64   :  { %v105_v48 = vshrl.u32 %v501_v38, %v104_v37  ;;  %v107_v49 = vshrl.u32 %v502_v40, %v104_v37  ;;  %v110_v50 = vshrl.u32 %v503_v42, %v104_v37  ;;  %v113_v51 = vshrl.u32 %v504_v44, %v104_v37 }
  0x65   :  { %v116_v52 = vshrl.u32 %v505_v46, %v104_v37  ;;  %v119_v54 = vshrl.u32 %v506_v53, %v104_v37  ;;  %vm122_vm9 = vcmp.lt.s32.totalorder %v102_v36, 2  ;;  %vm123_vm10 = vcmp.lt.s32.totalorder %v102_v36, 3 }
  0x66   :  { %v108_v56 = vor.u32 %v107_v49, %v106_v39  ;;  %v111_v57 = vor.u32 %v110_v50, %v109_v41  ;;  %v114_v58 = vor.u32 %v113_v51, %v112_v43 }
  0x67   :  { %v117_v59 = vor.u32 %v116_v52, %v115_v45  ;;  %v120_v60 = vor.u32 %v119_v54, %v118_v47 }
  0x68   :  { %v125_v61 = vsel %vm121_vm7, %v105_v48, %v108_v56  ;;  %v126_v62 = vsel %vm124_vm8, %v114_v58, 2102212464  ;;  %v129_v63 = vsel %vm121_vm7, %v108_v56, %v111_v57  ;;  %v133_v0 = vsel %vm121_vm7, %v111_v57, %v114_v58 }
  0x69   :  { %v127_v8 = vsel %vm123_vm10, %v111_v57, %v126_v62  ;;  %v130_v9 = vsel %vm124_vm8, %v117_v59, 920167782  ;;  %v134_v10 = vsel %vm124_vm8, %v120_v60, 1326507024  ;;  %vm181_vm8 = vweird.f32 %v603_v26 }
  0x6a   :  { %v131_v11 = vsel %vm123_vm10, %v114_v58, %v130_v9  ;;  %v135_v12 = vsel %vm123_vm10, %v117_v59, %v134_v10  ;;  %v128_v13 = vsel %vm122_vm9, %v125_v61, %v127_v8 }
  0x6b   :  { %v132_v15 = vsel %vm122_vm9, %v129_v63, %v131_v11  ;;  %v136_v16 = vsel %vm122_vm9, %v133_v0, %v135_v12  ;;  %v144_v25 = vmul.u32 %v137_v55, %v128_v13 }
  0x6c   :  { %v609_v21 = vmul.u32.u64.low %v137_v55, %v136_v16  ;;  %v610_v22 = vmul.u32.u64.high %v137_v55, %v136_v16, %v609_v21  ;;  %v612_v23 = vmul.u32.u64.low %v137_v55, %v132_v15  ;;  %v613_v24 = vmul.u32.u64.high %v137_v55, %v132_v15, %v612_v23 }
  0x6e   :  { %vm146_vm11 = vc.u32 %v610_v22, %v612_v23  ;;  %v147_v27 = vadd.s32 1, %v613_v24  ;;  %v145_v39 = vadd.s32 %v612_v23, %v610_v22 }
  0x70   :  { %v148_v28 = vsel %vm146_vm11, %v147_v27, %v613_v24  ;;  %v305_v24 = vmul.f32 %v559_v3, %v556_v2 }
  0x71   :  { %v149_v30 = vadd.s32 %v148_v28, %v144_v25  ;;  %v309_v25 = vmul.f32 %v565_v5, %v556_v2 }
  0x73   :  { %v150_v31 = vadd.s32 536870912, %v149_v30 }
  0x75   :  { %v151_v32 = vshrl.u32 %v150_v31, 30 }
  0x77   :  { %v152_v33 = vshll.u32 %v151_v32, 30  ;;  %v175_v52 = vsub.s32 4, %v151_v32 }
  0x79   :  { %v153_v34 = vsub.s32 %v149_v30, %v152_v33  ;;  %v176_v55 = vsel %vm91_vm13, %v175_v52, %v151_v32  ;;  %v350_v32 = vsub.s32 0, %v554_v1  ;;  %v355_v33 = vsub.s32 1, %v554_v1 }
  0x7a   :  { %v178_v57 = vsel %vm90_vm14, 0, %v176_v55 }
  0x7b   :  { %v155_v35 = vsub.s32 0, %v153_v34  ;;  %v182_v58 = vadd.s32 3, %v178_v57  ;;  %v287_v60 = vand.u32 3, %v178_v57 }
  0x7d   :  { %v393_v36 = vmin.u32 %v155_v35, %v153_v34  ;;  %v183_v59 = vand.u32 3, %v182_v58  ;;  %vm292_vm0 = vcmp.eq.s32.totalorder %v287_v60, 2  ;;  %vm289_vm5 = vcmp.eq.s32.totalorder %v287_v60, 0 }
  0x7e   :  { %vm288_vm7 = vcmp.lt.s32.totalorder %v287_v60, 2 }
  0x7f   :  { %v157_v37 = vclz %v393_v36  ;;  %vm188_vm15 = vcmp.eq.s32.totalorder %v183_v59, 2  ;;  %vm185_vm4 = vcmp.eq.s32.totalorder %v183_v59, 0  ;;  %vm184_vm6 = vcmp.lt.s32.totalorder %v183_v59, 2 }
  0x81   :  { %v394_v38 = vadd.s32 4294967294, %v157_v37 }
  0x83   :  { %vm395_vm12 = vcmp.lt.s32.totalorder %v394_v38, 0 }
  0x84   :  { %v160_v40 = vsel %vm395_vm12, 0, %v394_v38 }
  0x85   :  { %v161_v41 = vsub.s32 32, %v160_v40  ;;  %v162_v42 = vshll.u32 %v153_v34, %v160_v40  ;;  %v165_v43 = vsub.s32 4294967266, %v160_v40  ;;  %v361_v34 = vsub.s32 2, %v554_v1 }
  0x87   :  { %v163_v44 = vshrl.u32 %v145_v39, %v161_v41  ;;  %v166_v45 = vadd.s32 127, %v165_v43  ;;  %v347_v43 = vld [vmem:[#allocation10] sm:$0xff] }
  0x88   :  { %v368_v55 = vrot.slane %v347_v43, %v367_v4 }
  0x89   :  { %v164_v46 = vor.u32 %v163_v44, %v162_v42  ;;  %v167_v47 = vshll.u32 %v166_v45, 23 }
  0x8b   :  { %v168_v48 = vor.u32 4788187, %v167_v47  ;;  %v171_v49 = vcvt.s32.f32 %v164_v46 }
  0x8d   :  { %v169_v50 = vand.u32 2147483647, %v168_v48 }
  0x8f   :  { %v172_v51 = vmul.f32 %v171_v49, %v169_v50 }
  0x91   :  { %v173_v53 = vxor.u32 2147483648, %v172_v51 }
  0x93   :  { %v174_v54 = vsel %vm91_vm13, %v173_v53, %v172_v51 }
  0x94   :  { %v177_v56 = vsel %vm90_vm14, %v603_v26, %v174_v54 }
  0x95   :  { %417 = vcosq.f32 %v177_v56 }
  0x96   :  { %419 = vsinq.f32 %v177_v56 }
  0x97   :  { %421 = vrcp.f32 %v603_v26  ;;  %v318_v26 = vmul.f32 %v565_v5, %v559_v3 }
  0xa2   :  { %v418_v61 = vpop.eup %417 }
  0xa3   :  { %v420_v62 = vpop.eup %419  ;;  %v189_v63 = vxor.u32 2147483648, %v418_v61 }
  0xa4   :  { %v422_v29 = vpop.eup %421  ;;  %v186_v0 = vxor.u32 2147483648, %v420_v62 }
  0xa5   :  { %v190_v8 = vsel %vm188_vm15, %v189_v63, %v420_v62  ;;  %v294_v9 = vsel %vm292_vm0, %v189_v63, %v420_v62  ;;  %v298_v15 = vmul.f32 %v422_v29, %v422_v29  ;;  %v369_v63 = vmul.f32 %v368_v55, %v596_v20 }
  0xa6   :  { %v187_v10 = vsel %vm185_vm4, %v418_v61, %v186_v0  ;;  %v291_v11 = vsel %vm289_vm5, %v418_v61, %v186_v0 }
  0xa7   :  { %v191_v12 = vsel %vm184_vm6, %v187_v10, %v190_v8  ;;  %v295_v13 = vsel %vm288_vm7, %v291_v11, %v294_v9 }
  0xa8   :  { %v192_v16 = vsel %vm181_vm8, nan, %v191_v12  ;;  %v296_v21 = vsel %vm181_vm8, nan, %v295_v13 }
  0xa9   :  { %v193_v22 = vmul.f32 %v422_v29, %v192_v16  ;;  %v297_v23 = vsub.f32 1.0, %v296_v21 }
  0xab   :  { %v299_v27 = vmul.f32 %v298_v15, %v297_v23  ;;  %v303_v28 = vsub.f32 0.0, %v193_v22  ;;  %v312_v30 = vmul.f32 %v193_v22, %v565_v5  ;;  %v323_v31 = vmul.f32 %v193_v22, %v556_v2 }
  0xac   :  { %v308_v45 = vmul.f32 %v193_v22, %v559_v3 }
  0xad   :  { %v301_v35 = vmul.f32 %v300_v17, %v299_v27  ;;  %v304_v36 = vmul.f32 %v303_v28, %v565_v5  ;;  %v306_v37 = vmul.f32 %v305_v24, %v299_v27  ;;  %v310_v38 = vmul.f32 %v309_v25, %v299_v27 }
  0xae   :  { %v315_v39 = vmul.f32 %v314_v18, %v299_v27  ;;  %v317_v40 = vmul.f32 %v303_v28, %v556_v2  ;;  %v319_v41 = vmul.f32 %v318_v26, %v299_v27  ;;  %v321_v42 = vmul.f32 %v303_v28, %v559_v3 }
  0xaf   :  { %v302_v44 = vadd.f32 1.0, %v301_v35  ;;  %v313_v46 = vadd.f32 %v312_v30, %v306_v37  ;;  %v307_v17 = vadd.f32 %v306_v37, %v304_v36  ;;  %v326_v6 = vmul.f32 %v325_v19, %v299_v27 }
  0xb0   :  { %v316_v5 = vadd.f32 1.0, %v315_v39  ;;  %v322_v47 = vadd.f32 %v321_v42, %v310_v38  ;;  %v324_v48 = vadd.f32 %v323_v31, %v319_v41  ;;  %v351_v18 = vrot.slane %v347_v43, %v350_v32 }
  0xb1   :  { %v356_v2 = vrot.slane %v347_v43, %v355_v33  ;;  %v320_v49 = vadd.f32 %v319_v41, %v317_v40  ;;  %v311_v51 = vadd.f32 %v310_v38, %v308_v45  ;;  %v327_v52 = vadd.f32 1.0, %v326_v6 }
  0xb2   :  { %v334_v50 = vsel %vm332_vm1, %v322_v47, 0.0  ;;  %v337_v3 = vsel %vm332_vm1, %v324_v48, 0.0  ;;  %v362_v19 = vrot.slane %v347_v43, %v361_v34 }
  0xb3   :  { %v335_v53 = vsel %vm331_vm2, %v313_v46, %v334_v50  ;;  %v338_v54 = vsel %vm331_vm2, %v316_v5, %v337_v3  ;;  %v340_v56 = vsel %vm332_vm1, %v327_v52, 0.0 }
  0xb4   :  { %v336_v7 = vsel %vm330_vm3, %v302_v44, %v335_v53  ;;  %v339_v14 = vsel %vm330_vm3, %v307_v17, %v338_v54  ;;  %v341_v59 = vsel %vm331_vm2, %v320_v49, %v340_v56 }
  0xb5   :  { %v352_v57 = vmul.f32 %v351_v18, %v336_v7  ;;  %v357_v58 = vmul.f32 %v356_v2, %v339_v14  ;;  %v342_v60 = vsel %vm330_vm3, %v311_v51, %v341_v59 }
  0xb6   :  { %v363_v62 = vmul.f32 %v362_v19, %v342_v60 }
  0xb7   :  { %v358_v61 = vadd.f32 %v357_v58, %v352_v57 }
  0xb9   :  { %v364_v29 = vadd.f32 %v363_v62, %v358_v61 }
  0xbb   :  { %v370_v0 = vadd.f32 %v369_v63, %v364_v29 }
  0xbd   :  { %371 = vst [vmem:[#allocation11] sm:$0xff] %v370_v0 }
  0xbe   :  { %480 = shalt.err (!%p477_p10)
}
  0xbf   :  { %381 = dma.vmem_to_hbm [thread:$0]  %s379_s22, 128, %s676_s4, [#allocation6]  }
  0xc0   :  { %495 = dma.done.wait [#allocation6], 128  }
  0xc1   :  { %496 = vsyncadd [#allocation6], 4294967168 }
  0xc2   :  { %385 = vsyncpa [#allocation5], 1 }
  0xc3   :  { %386 = vsyncpa [#allocation6], 1 }
  0xc4   :  { %387 = vsyncpa [#allocation7], 1 }
  0xc5   :  { %388 = vsyncpa [#allocation9], 1 }

</bundles_post_ra>
